<compile_context>
chip_gen: v5e
topology: v5e:2x2
jax: 0.10.0
libtpu: 0.0.40
codegen_flags: <defaults>
</compile_context>

<pallas_src>
import jax
import jax.numpy as jnp
from jax.experimental import pallas as pl
from jax.experimental.pallas import tpu as pltpu

D_IN, D_H1, D_H2, D_OUT = 22, 44, 11, 1

# Default batch tile: big enough to amortize per-step overhead (~6.6 MB f32
# working set per step), small enough for v5e's 16 MiB scoped VMEM and v7x's
# 32 MiB scoped / 64 MiB physical VMEM with default double buffering.
_MAX_TB = 16384


def mlp_kernel(x_ref, w1_ref, b1_ref, w2_ref, b2_ref, w3_ref, b3_ref, o_ref):
    # Batch-on-sublanes layout: x tile is (TB, 22), output tile is (TB, 1).
    x = x_ref[...]                                                     # (TB, 22)

    # Layer 1: Linear(22 -> 44) + ReLU on the MXU, f32 accumulation.  x may be
    # bf16 (w1 matches its dtype); activations are f32 from here on.
    h1 = jnp.dot(x, w1_ref[...], preferred_element_type=jnp.float32) + b1_ref[...]
    h1 = jnp.maximum(h1, 0.0)                                          # (TB, 44)

    # Layer 2: Linear(44 -> 11) + Sigmoid.
    h2 = jnp.dot(h1, w2_ref[...], preferred_element_type=jnp.float32) + b2_ref[...]
    h2 = jax.nn.sigmoid(h2)                                            # (TB, 11)

    # Layer 3: Linear(11 -> 1) + Sigmoid as a VPU broadcast-mul + lane reduce
    # (avoids a degenerate (., 11) x (11, 1) MXU pass producing a 1-wide result).
    h3 = jnp.sum(h2 * w3_ref[...], axis=-1, keepdims=True) + b3_ref[...]   # (TB, 1)
    o_ref[...] = jax.nn.sigmoid(h3)


def titanic_mlp(x, w1, b1, w2, b2, w3, b3, *, tb=None):
    """Forward pass of the Titanic MLP.

    x  : (N, 22) float32 or bfloat16 -- PyTorch (batch, in_features) layout,
         consumed as-is (no transpose / pad pass over HBM).
    w* : PyTorch nn.Linear layout (out_features, in_features).
    b* : (out_features,).
    Returns (N, 1) float32, matching the PyTorch module output.
    """
    n = x.shape[0]
    if tb is None:
        # Small N: one full-array block (no grid overhead).  Large N: big tiles.
        tb = n if n <= _MAX_TB else _MAX_TB
    num_tiles = pl.cdiv(n, tb)

    # Tiny (couple-KB) layout plumbing on the weights only.
    w1t = w1.T.astype(x.dtype)          # (22, 44), dtype-matched to x for the MXU
    w2t = w2.T.astype(jnp.float32)      # (44, 11)
    b1r = b1.reshape(1, D_H1).astype(jnp.float32)
    b2r = b2.reshape(1, D_H2).astype(jnp.float32)
    w3r = w3.reshape(1, D_H2).astype(jnp.float32)
    b3r = b3.reshape(1, 1).astype(jnp.float32)

    const = lambda i: (0, 0)
    x_bytes = n * D_IN * jnp.dtype(x.dtype).itemsize
    weight_bytes = sum(int(a.size) * jnp.dtype(a.dtype).itemsize
                       for a in (w1t, b1r, w2t, b2r, w3r, b3r))

    out = pl.pallas_call(
        mlp_kernel,
        out_shape=jax.ShapeDtypeStruct((n, D_OUT), jnp.float32),
        grid=(num_tiles,),
        in_specs=[
            pl.BlockSpec((tb, D_IN), lambda i: (i, 0)),   # x tile: contiguous rows
            pl.BlockSpec((D_IN, D_H1), const),            # w1^T  (VMEM-resident)
            pl.BlockSpec((1, D_H1), const),               # b1 row
            pl.BlockSpec((D_H1, D_H2), const),            # w2^T  (VMEM-resident)
            pl.BlockSpec((1, D_H2), const),               # b2 row
            pl.BlockSpec((1, D_H2), const),               # w3 row
            pl.BlockSpec((1, 1), const),                  # b3 scalar
        ],
        out_specs=pl.BlockSpec((tb, D_OUT), lambda i: (i, 0)),
        compiler_params=pltpu.CompilerParams(
            dimension_semantics=("parallel",),            # batch steps independent
        ),
        cost_estimate=pl.CostEstimate(
            flops=2 * n * (D_IN * D_H1 + D_H1 * D_H2 + D_H2 * D_OUT),
            transcendentals=2 * n * (D_H2 + D_OUT),       # sigmoid ~ exp + recip
            bytes_accessed=x_bytes + n * D_OUT * 4 + weight_bytes,
        ),
    )(x, w1t, b1r, w2t, b2r, w3r, b3r)

    return out


def init_params(key):
    """Deterministic init mimicking PyTorch Linear default U[-1/sqrt(fan_in), 1/sqrt(fan_in)],
    in PyTorch layout: W (out_features, in_features), b (out_features,)."""
    dims = [(D_IN, D_H1), (D_H1, D_H2), (D_H2, D_OUT)]
    params = []
    for i, (fan_in, fan_out) in enumerate(dims):
        kw, kb = jax.random.split(jax.random.fold_in(key, i))
        bound = 1.0 / jnp.sqrt(float(fan_in))
        w = jax.random.uniform(kw, (fan_out, fan_in), jnp.float32, -bound, bound)
        b = jax.random.uniform(kb, (fan_out,), jnp.float32, -bound, bound)
        params += [w, b]
    return params


def reference(x, w1, b1, w2, b2, w3, b3):
    h1 = jnp.maximum(x @ w1.T + b1, 0.0)
    h2 = jax.nn.sigmoid(h1 @ w2.T + b2)
    return jax.nn.sigmoid(h2 @ w3.T + b3)


if __name__ == "__main__":
    key = jax.random.PRNGKey(0)
    kx, kp = jax.random.split(key)
    params = init_params(kp)

    # 1) Small batch, single full-array block (Titanic-sized usage).
    x_small = jax.random.normal(kx, (8, D_IN), jnp.float32)
    out = jax.block_until_ready(titanic_mlp(x_small, *params))
    ref = reference(x_small, *params)
    assert out.shape == (8, 1)
    assert jnp.allclose(out, ref, atol=1e-5, rtol=1e-5)

    # 2) Multi-tile grid path: batch tiled over sublanes, weights resident.
    x_big = jax.random.normal(jax.random.fold_in(kx, 1), (1024, D_IN), jnp.float32)
    out_big = jax.block_until_ready(titanic_mlp(x_big, *params, tb=256))
    ref_big = reference(x_big, *params)
    assert out_big.shape == (1024, 1)
    assert jnp.allclose(out_big, ref_big, atol=1e-5, rtol=1e-5)

    # 3) bf16-input path (halves the dominant HBM traffic; f32 MXU accumulation,
    #    f32 activations so it is also safe on v5e).
    out_bf16 = jax.block_until_ready(
        titanic_mlp(x_big.astype(jnp.bfloat16), *params, tb=256))
    assert out_bf16.shape == (1024, 1)
    assert jnp.allclose(out_bf16, ref_big, atol=2e-2)

    print("KERNEL_OK")
</pallas_src>

<mosaic_0001>
module attributes {stable_mosaic.version = 11 : i64} {
  func.func @mlp_kernel(%arg0: i32, %arg1: memref<8x22xf32, #tpu.memory_space<vmem>>, %arg2: memref<22x44xf32, #tpu.memory_space<vmem>>, %arg3: memref<1x44xf32, #tpu.memory_space<vmem>>, %arg4: memref<44x11xf32, #tpu.memory_space<vmem>>, %arg5: memref<1x11xf32, #tpu.memory_space<vmem>>, %arg6: memref<1x11xf32, #tpu.memory_space<vmem>>, %arg7: memref<1x1xf32, #tpu.memory_space<vmem>>, %arg8: memref<8x1xf32, #tpu.memory_space<vmem>>) attributes {dimension_semantics = [#tpu.dimension_semantics<parallel>], iteration_bounds = array<i64: 1>, scalar_prefetch = 0 : i64, scratch_operands = 0 : i64, tpu.core_type = #tpu.core_type<tc>, window_params = [{transform_indices = @transform_0, window_bounds = array<i64: 8, 22>}, {pipeline_mode = #tpu.pipeline_mode<synchronous>, transform_indices = @transform_1, window_bounds = array<i64: 22, 44>}, {pipeline_mode = #tpu.pipeline_mode<synchronous>, transform_indices = @transform_2, window_bounds = array<i64: 1, 44>}, {pipeline_mode = #tpu.pipeline_mode<synchronous>, transform_indices = @transform_3, window_bounds = array<i64: 44, 11>}, {pipeline_mode = #tpu.pipeline_mode<synchronous>, transform_indices = @transform_4, window_bounds = array<i64: 1, 11>}, {pipeline_mode = #tpu.pipeline_mode<synchronous>, transform_indices = @transform_5, window_bounds = array<i64: 1, 11>}, {pipeline_mode = #tpu.pipeline_mode<synchronous>, transform_indices = @transform_6, window_bounds = array<i64: 1, 1>}, {transform_indices = @transform_7, window_bounds = array<i64: 8, 1>}]} {
    %c0 = arith.constant 0 : index
    %c0_0 = arith.constant 0 : index
    %0 = vector.load %arg1[%c0, %c0_0] : memref<8x22xf32, #tpu.memory_space<vmem>>, vector<8x22xf32>
    %c0_1 = arith.constant 0 : index
    %c0_2 = arith.constant 0 : index
    %1 = vector.load %arg2[%c0_1, %c0_2] : memref<22x44xf32, #tpu.memory_space<vmem>>, vector<22x44xf32>
    %cst = arith.constant dense<0.000000e+00> : vector<8x44xf32>
    %2 = tpu.matmul %0, %1, %cst {dimension_numbers = #tpu.dot_dimension_numbers<[1], [0], [0], [1], [0, 0, 1, 1], [], []>} : vector<8x22xf32>, vector<22x44xf32>, vector<8x44xf32> -> vector<8x44xf32>
    %c0_3 = arith.constant 0 : index
    %c0_4 = arith.constant 0 : index
    %3 = vector.load %arg3[%c0_3, %c0_4] : memref<1x44xf32, #tpu.memory_space<vmem>>, vector<1x44xf32>
    %4 = vector.broadcast %3 : vector<1x44xf32> to vector<8x44xf32>
    %5 = arith.addf %2, %4 : vector<8x44xf32>
    %cst_5 = arith.constant 0.000000e+00 : f32
    %6 = vector.broadcast %cst_5 : f32 to vector<8x44xf32>
    %7 = arith.maximumf %5, %6 : vector<8x44xf32>
    %c0_6 = arith.constant 0 : index
    %c0_7 = arith.constant 0 : index
    %8 = vector.load %arg4[%c0_6, %c0_7] : memref<44x11xf32, #tpu.memory_space<vmem>>, vector<44x11xf32>
    %cst_8 = arith.constant dense<0.000000e+00> : vector<8x11xf32>
    %9 = tpu.matmul %7, %8, %cst_8 {dimension_numbers = #tpu.dot_dimension_numbers<[1], [0], [0], [1], [0, 0, 1, 1], [], []>} : vector<8x44xf32>, vector<44x11xf32>, vector<8x11xf32> -> vector<8x11xf32>
    %c0_9 = arith.constant 0 : index
    %c0_10 = arith.constant 0 : index
    %10 = vector.load %arg5[%c0_9, %c0_10] : memref<1x11xf32, #tpu.memory_space<vmem>>, vector<1x11xf32>
    %11 = vector.broadcast %10 : vector<1x11xf32> to vector<8x11xf32>
    %12 = arith.addf %9, %11 : vector<8x11xf32>
    %13 = arith.negf %12 : vector<8x11xf32>
    %14 = math.exp %13 : vector<8x11xf32>
    %cst_11 = arith.constant 1.000000e+00 : f32
    %15 = vector.broadcast %cst_11 : f32 to vector<8x11xf32>
    %16 = arith.addf %15, %14 : vector<8x11xf32>
    %17 = arith.divf %15, %16 : vector<8x11xf32>
    %c0_12 = arith.constant 0 : index
    %c0_13 = arith.constant 0 : index
    %18 = vector.load %arg6[%c0_12, %c0_13] : memref<1x11xf32, #tpu.memory_space<vmem>>, vector<1x11xf32>
    %19 = vector.broadcast %18 : vector<1x11xf32> to vector<8x11xf32>
    %20 = arith.mulf %17, %19 : vector<8x11xf32>
    %cst_14 = arith.constant dense<0.000000e+00> : vector<8xf32>
    %21 = vector.multi_reduction <add>, %20, %cst_14 [1] : vector<8x11xf32> to vector<8xf32>
    %22 = vector.shape_cast %21 : vector<8xf32> to vector<8x1xf32>
    %c0_15 = arith.constant 0 : index
    %c0_16 = arith.constant 0 : index
    %23 = vector.load %arg7[%c0_15, %c0_16] : memref<1x1xf32, #tpu.memory_space<vmem>>, vector<1x1xf32>
    %24 = vector.broadcast %23 : vector<1x1xf32> to vector<8x1xf32>
    %25 = arith.addf %22, %24 : vector<8x1xf32>
    %26 = arith.negf %25 : vector<8x1xf32>
    %27 = math.exp %26 : vector<8x1xf32>
    %cst_17 = arith.constant 1.000000e+00 : f32
    %28 = vector.broadcast %cst_17 : f32 to vector<8x1xf32>
    %29 = arith.addf %28, %27 : vector<8x1xf32>
    %30 = arith.divf %28, %29 : vector<8x1xf32>
    %c0_18 = arith.constant 0 : index
    %c0_19 = arith.constant 0 : index
    %31 = vector.load %arg8[%c0_18, %c0_19] : memref<8x1xf32, #tpu.memory_space<vmem>>, vector<8x1xf32>
    tpu.vector_store %arg8[%c0_18, %c0_19], %30 {strides = array<i32>} : memref<8x1xf32, #tpu.memory_space<vmem>>, vector<8x1xf32>,
    return
  }
  func.func @transform_0(%arg0: i32) -> (i32, i32) {
    %c0_i32 = arith.constant 0 : i32
    %c0_i32_0 = arith.constant 0 : i32
    return %arg0, %c0_i32 : i32, i32
  }
  func.func @transform_1(%arg0: i32) -> (i32, i32) {
    %c0_i32 = arith.constant 0 : i32
    %c0_i32_0 = arith.constant 0 : i32
    %c0_i32_1 = arith.constant 0 : i32
    return %c0_i32, %c0_i32_0 : i32, i32
  }
  func.func @transform_2(%arg0: i32) -> (i32, i32) {
    %c0_i32 = arith.constant 0 : i32
    %c0_i32_0 = arith.constant 0 : i32
    %c0_i32_1 = arith.constant 0 : i32
    return %c0_i32, %c0_i32_0 : i32, i32
  }
  func.func @transform_3(%arg0: i32) -> (i32, i32) {
    %c0_i32 = arith.constant 0 : i32
    %c0_i32_0 = arith.constant 0 : i32
    %c0_i32_1 = arith.constant 0 : i32
    return %c0_i32, %c0_i32_0 : i32, i32
  }
  func.func @transform_4(%arg0: i32) -> (i32, i32) {
    %c0_i32 = arith.constant 0 : i32
    %c0_i32_0 = arith.constant 0 : i32
    %c0_i32_1 = arith.constant 0 : i32
    return %c0_i32, %c0_i32_0 : i32, i32
  }
  func.func @transform_5(%arg0: i32) -> (i32, i32) {
    %c0_i32 = arith.constant 0 : i32
    %c0_i32_0 = arith.constant 0 : i32
    %c0_i32_1 = arith.constant 0 : i32
    return %c0_i32, %c0_i32_0 : i32, i32
  }
  func.func @transform_6(%arg0: i32) -> (i32, i32) {
    %c0_i32 = arith.constant 0 : i32
    %c0_i32_0 = arith.constant 0 : i32
    %c0_i32_1 = arith.constant 0 : i32
    return %c0_i32, %c0_i32_0 : i32, i32
  }
  func.func @transform_7(%arg0: i32) -> (i32, i32) {
    %c0_i32 = arith.constant 0 : i32
    %c0_i32_0 = arith.constant 0 : i32
    return %arg0, %c0_i32 : i32, i32
  }
}

</mosaic_0001>

<bundles_post_ra>
// kernel: tpu_custom_call.1
= control target key start
LH: loop header
LB: loop body
LE: loop exit
PB: predicated region body
PF: predicated region fallthrough
CT: control target
= control target key end

     0   :  { %vm40_vm0 = vcmask 1045504   ;;  %vm79_vm1 = vcmask 1043456   ;;  %vm36_vm2 = vcmask 179200   ;;  %vm75_vm3 = vcmask 359424   ;;  %s264_s1 = inlined_call_operand.vmem [shape: f32[22,44], index: 1, kind: input, shape index: {}]   ;;  %s265_s3 = inlined_call_operand.vmem [shape: f32[44,11], index: 3, kind: input, shape index: {}]   ;;  %s266_s0 = inlined_call_operand.vmem [shape: f32[8,22], index: 0, kind: input, shape index: {}]   ;;  %s267_s2 = inlined_call_operand.vmem [shape: f32[1,44], index: 2, kind: input, shape index: {}]   ;;  %s268_s4 = inlined_call_operand.vmem [shape: f32[1,11], index: 4, kind: input, shape index: {}]   ;;  %s269_s5 = inlined_call_operand.vmem [shape: f32[1,11], index: 5, kind: input, shape index: {}]   ;;  %s270_s6 = inlined_call_operand.<no memory space> [shape: f32[1,1], index: 6, kind: input, shape index: {}]   ;;  %s271_s7 = inlined_call_operand.vmem [shape: f32[8,1], index: 7, kind: output, shape index: {}]  }
   0x1   :  { %v31_v0 = vld [vmem:[%s264_s1 + $0x10] sm:$0x3f]  ;;  %v30_v1 = vld [vmem:[%s264_s1 + $0x8] sm:$0xff]  ;;  %v69_v3 = vld [vmem:[%s265_s3 + $0x20] sm:$0xff]  ;;  %v12_v17 = vstv %s270_s6  ;;  %vm127_vm8 = vcmask 89088   ;;  %vm155_vm12 = vcmask 7168  }
   0x2   :  { %161 = vmatpush.msk.msra.mxu0 %vm40_vm0, %v31_v0  ;;  %v70_v2 = vld [vmem:[%s265_s3 + $0x28] sm:$0xf]  ;;  %v29_v4 = vld [vmem:[%s264_s1] sm:$0xff]  ;;  %v68_v6 = vld [vmem:[%s265_s3 + $0x18] sm:$0xff]  ;;  %13 = vst [vmem:[#allocation2] sm:$0x1] %v12_v17 }
   0x3   :  { %163 = vmatpush.msk.msra.mxu1 %vm79_vm1, %v70_v2  ;;  %v28_v5 = vld [vmem:[%s266_s0] sm:$0xff]  ;;  %v67_v7 = vld [vmem:[%s265_s3 + $0x10] sm:$0xff]  ;;  %v66_v8 = vld [vmem:[%s265_s3 + $0x8] sm:$0xff] }
   0x4   :  { %58 = vmatpush.msra.mxu0 %v30_v1  ;;  %v65_v9 = vld [vmem:[%s265_s3] sm:$0xff] }
   0x5   :  { %94 = vmatpush.msra.mxu1 %v69_v3  ;;  %v167_v10 = vld [vmem:[%s267_s2] ss:$0 sm:$0xff] }
   0x6   :  { %59 = vmatpush.msra.mxu0 %v29_v4  ;;  %v168_v14 = vld [vmem:[%s268_s4] ss:$0 sm:$0xff] }
   0x7   :  { %162 = vmatmul.msk.f32.vlgmr.msra.gmra.mxu0 %vm36_vm2, %v28_v5  ;;  %95 = vmatpush.msra.mxu1 %v68_v6  ;;  %v169_v28 = vld [vmem:[%s269_s5] ss:$0 sm:$0xff] }
   0x9   :  { %96 = vmatpush.msra.mxu1 %v67_v7  ;;  %v170_v34 = vld [vmem:[#allocation2] ss:$0 sm:$0xff] }
   0xb   :  { %97 = vmatpush.msra.mxu1 %v66_v8 }
   0xd   :  { %98 = vmatpush.msra.mxu1 %v65_v9 }
  0x84   :  { %v61_v11 = vpop.f32.mrf.mxu0 }
  0x85   :  { %v62_v12 = vadd.f32 %v167_v10, %v61_v11 }
  0x87   :  { %v64_v13 = vmax.f32 %v62_v12, 0.0 }
  0x89   :  { %164 = vmatmul.msk.f32.vlgmr.msra.gmra.mxu1 %vm75_vm3, %v64_v13 }
 0x106   :  { %v100_v15 = vpop.f32.mrf.mxu1 }
 0x107   :  { %v101_v16 = vadd.f32 %v168_v14, %v100_v15 }
 0x109   :  { %v165_v18 = vmul.f32 -1.442695, %v101_v16 }
 0x10b   :  { %171 = vpow2.f32 %v165_v18 }
 0x111   :  { %v172_v19 = vpop.eup %171 }
 0x112   :  { %v106_v20 = vadd.f32 1.0, %v172_v19 }
 0x114   :  { %173 = vrcp.f32 %v106_v20  ;;  %v118_v24 = vand.u32 2147483648, %v106_v20  ;;  %v116_v26 = vand.u32 2147483647, %v106_v20  ;;  %vm112_vm5 = vweird.f32 %v106_v20 }
 0x116   :  { %v119_v29 = vor.u32 1.1754944e-38, %v118_v24  ;;  %vm117_vm7 = vcmp.eq.f32.partialorder %v116_v26, 8.507059e+37 }
 0x11a   :  { %v174_v21 = vpop.eup %173 }
 0x11b   :  { %v108_v22 = vmul.f32 %v174_v21, %v106_v20  ;;  %vm113_vm4 = vweird.f32 %v174_v21 }
 0x11c   :  { %vm114_vm6 = vmor %vm112_vm5, %vm113_vm4 }
 0x11d   :  { %v109_v23 = vsub.f32 1.0, %v108_v22 }
 0x11f   :  { %v110_v25 = vmul.f32 %v174_v21, %v109_v23 }
 0x121   :  { %v111_v27 = vadd.f32 %v174_v21, %v110_v25 }
 0x123   :  { %v115_v30 = vsel %vm114_vm6, %v174_v21, %v111_v27 }
 0x124   :  { %v120_v31 = vsel %vm117_vm7, %v119_v29, %v115_v30 }
 0x125   :  { %v126_v32 = vmul.f32 %v169_v28, %v120_v31 }
 0x127   :  { %v128_v33 = vsel %vm127_vm8, %v126_v32, 0.0 }
 0x128   :  { %129 = vadd.xlane.f32.xlu0 %v128_v33 }
 0x19b   :  { %v130_v35 = vpop.xlane.xlu0 %129 }
 0x19c   :  { %v135_v36 = vadd.f32 %v170_v34, %v130_v35 }
 0x19e   :  { %v166_v37 = vmul.f32 -1.442695, %v135_v36 }
 0x1a0   :  { %175 = vpow2.f32 %v166_v37 }
 0x1a6   :  { %v176_v38 = vpop.eup %175 }
 0x1a7   :  { %v139_v39 = vadd.f32 1.0, %v176_v38 }
 0x1a9   :  { %177 = vrcp.f32 %v139_v39  ;;  %v151_v43 = vand.u32 2147483648, %v139_v39  ;;  %v149_v45 = vand.u32 2147483647, %v139_v39  ;;  %vm145_vm10 = vweird.f32 %v139_v39 }
 0x1ab   :  { %v152_v47 = vor.u32 1.1754944e-38, %v151_v43  ;;  %vm150_vm13 = vcmp.eq.f32.partialorder %v149_v45, 8.507059e+37 }
 0x1af   :  { %v178_v40 = vpop.eup %177 }
 0x1b0   :  { %v141_v41 = vmul.f32 %v178_v40, %v139_v39  ;;  %vm146_vm9 = vweird.f32 %v178_v40 }
 0x1b1   :  { %vm147_vm11 = vmor %vm145_vm10, %vm146_vm9 }
 0x1b2   :  { %v142_v42 = vsub.f32 1.0, %v141_v41 }
 0x1b4   :  { %v143_v44 = vmul.f32 %v178_v40, %v142_v42 }
 0x1b6   :  { %v144_v46 = vadd.f32 %v178_v40, %v143_v44 }
 0x1b8   :  { %v148_v48 = vsel %vm147_vm11, %v178_v40, %v144_v46 }
 0x1b9   :  { %v153_v49 = vsel %vm150_vm13, %v152_v47, %v148_v48 }
 0x1ba   :  { %156 = vst.msk [vmem:[%s271_s7] sm:$0xff] %vm155_vm12, %v153_v49 }

</bundles_post_ra>
